<compile_context>
chip_gen: v7x
topology: tpu7x:2x2x1
jax: 0.10.0
libtpu: 0.0.40
codegen_flags: <defaults>
</compile_context>

<pallas_src>
import jax
import jax.numpy as jnp
from jax.experimental import pallas as pl
from jax.experimental.pallas import tpu as pltpu

LANE = 128  # TPU vreg lane width


def _round_up(n, m):
    return ((n + m - 1) // m) * m


def _mlp_kernel(x_ref, w1_ref, b1_ref, w2_ref, b2_ref, o_ref, h_ref):
    # fc1 + bias + ReLU: run once per batch tile (first output tile only),
    # staged into a VMEM scratch in the compute dtype.
    @pl.when(pl.program_id(1) == 0)
    def _():
        h = jnp.dot(x_ref[...], w1_ref[...], preferred_element_type=jnp.float32)
        h_ref[...] = jnp.maximum(h + b1_ref[...], 0.0).astype(h_ref.dtype)

    # fc2 on the current output-width tile, f32 accumulation on the MXU.
    out = jnp.dot(h_ref[...], w2_ref[...], preferred_element_type=jnp.float32)
    o_ref[...] = (out + b2_ref[...]).astype(o_ref.dtype)


def prepare_mlp_params(w1, b1, w2, b2, compute_dtype=jnp.bfloat16):
    """Zero-pad parameters to lane-aligned shapes ONCE (host side).

    w1: (dx, hid)   b1: (hid,)   w2: (hid, out)   b2: (out,)
    Padded bias columns are zero and padded weight rows/cols are zero, so the
    padded lanes carry exact zeros through ReLU and fc2.
    Default compute dtype is bfloat16 (MXU-native); pass float32 for exactness.
    """
    dx, hid = w1.shape
    out_dim = w2.shape[1]
    hid_p = _round_up(hid, LANE)
    out_p = _round_up(out_dim, LANE)

    w1_p = jnp.zeros((dx, hid_p), compute_dtype).at[:, :hid].set(
        w1.astype(compute_dtype))
    b1_p = jnp.zeros((1, hid_p), jnp.float32).at[0, :hid].set(
        b1.astype(jnp.float32))
    w2_p = jnp.zeros((hid_p, out_p), compute_dtype).at[:hid, :out_dim].set(
        w2.astype(compute_dtype))
    b2_p = jnp.zeros((1, out_p), jnp.float32).at[0, :out_dim].set(
        b2.astype(jnp.float32))

    return dict(w1=w1_p, b1=b1_p, w2=w2_p, b2=b2_p,
                dx=dx, hid_p=hid_p, out_p=out_p, out_dim=out_dim,
                compute_dtype=compute_dtype)


def mlp_forward(x, params, *, block_b=256, block_n=1024, out_dtype=None):
    """Pallas implementation of MLP.forward:
       relu(x.view(-1, dx) @ W1 + b1) @ W2 + b2
    """
    dx = params["dx"]
    hid_p = params["hid_p"]
    out_p = params["out_p"]
    out_dim = params["out_dim"]
    cdt = params["compute_dtype"]

    if out_dtype is None:
        out_dtype = x.dtype

    x2d = x.reshape(-1, dx)
    if x2d.dtype != cdt:
        x2d = x2d.astype(cdt)
    B = x2d.shape[0]

    itemsize = jnp.dtype(cdt).itemsize
    out_itemsize = jnp.dtype(out_dtype).itemsize
    # Sublane packing: 8 rows (f32), 16 (bf16), 32 (int8/fp8).
    align = max(8, 32 // itemsize)

    # Batch tile.  If the whole batch fits in one block, use it exactly
    # (block == full array dim is always a legal tile); otherwise an aligned
    # tile, and Pallas clips the ragged last block (no host-side pad).
    if B <= block_b:
        TB = B
    else:
        TB = max(align, (block_b // align) * align)
    grid_b = pl.cdiv(B, TB)

    # Output-width tile (multiple of 128); bounds w2 residency in VMEM.
    TN = min(out_p, _round_up(block_n, LANE))
    grid_n = pl.cdiv(out_p, TN)

    # ---- VMEM budget estimate (resident weights single-buffered) -----------
    wn_buf = 1 if grid_n == 1 else 2
    vmem_needed = (
        dx * hid_p * itemsize            # w1 (resident, 1 buffer)
        + hid_p * 4                      # b1 (f32, resident)
        + hid_p * TN * itemsize * wn_buf  # w2 tile(s)
        + TN * 4 * wn_buf                # b2 tile(s)
        + 2 * TB * dx * itemsize         # x tile (double-buffered)
        + 2 * TB * TN * out_itemsize     # out tile (double-buffered)
        + TB * hid_p * itemsize          # h scratch
    )
    vmem_limit = int(min(max(int(vmem_needed * 1.25) + (4 << 20), 32 << 20),
                         128 << 20))

    # ---- Cost estimate (advisory, helps XLA schedule surrounding ops) ------
    flops = 2 * B * (dx * hid_p + hid_p * out_p)
    bytes_accessed = int(
        x2d.size * itemsize
        + params["w1"].size * itemsize + params["w2"].size * itemsize
        + params["b1"].size * 4 + params["b2"].size * 4
        + B * out_p * out_itemsize)
    cost = pl.CostEstimate(flops=flops, transcendentals=0,
                           bytes_accessed=bytes_accessed)

    def build_in_specs(use_buffered):
        x_spec = pl.BlockSpec((TB, dx), lambda i, j: (i, 0))
        if use_buffered:
            const_kw = dict(pipeline_mode=pl.Buffered(1))
            w2_kw = const_kw if grid_n == 1 else {}
            return [
                x_spec,
                pl.BlockSpec((dx, hid_p), lambda i, j: (0, 0), **const_kw),
                pl.BlockSpec((1, hid_p), lambda i, j: (0, 0), **const_kw),
                pl.BlockSpec((hid_p, TN), lambda i, j: (0, j), **w2_kw),
                pl.BlockSpec((1, TN), lambda i, j: (0, j), **w2_kw),
            ]
        return [
            x_spec,
            pl.BlockSpec((dx, hid_p), lambda i, j: (0, 0)),
            pl.BlockSpec((1, hid_p), lambda i, j: (0, 0)),
            pl.BlockSpec((hid_p, TN), lambda i, j: (0, j)),
            pl.BlockSpec((1, TN), lambda i, j: (0, j)),
        ]

    def run(use_buffered):
        return pl.pallas_call(
            _mlp_kernel,
            out_shape=jax.ShapeDtypeStruct((B, out_p), out_dtype),
            grid=(grid_b, grid_n),
            in_specs=build_in_specs(use_buffered),
            out_specs=pl.BlockSpec((TB, TN), lambda i, j: (i, j)),
            scratch_shapes=[pltpu.VMEM((TB, hid_p), cdt)],
            compiler_params=pltpu.CompilerParams(
                dimension_semantics=("parallel", "arbitrary"),
                vmem_limit_bytes=vmem_limit),
            cost_estimate=cost,
        )(x2d, params["w1"], params["b1"], params["w2"], params["b2"])

    try:
        out = run(True)
    except Exception:
        # Installed jax may not support pl.Buffered(1) on top-level pallas_call;
        # fall back to default (2-deep) buffering of the resident weights.
        out = run(False)

    return out[:B, :out_dim]


def init_mlp_params(key, dx, output_size, hid=24):
    """Matches PyTorch nn.Linear default init; weights stored as (in, out)."""
    k1, k2, k3, k4 = jax.random.split(key, 4)
    lim1 = 1.0 / jnp.sqrt(jnp.float32(dx))
    lim2 = 1.0 / jnp.sqrt(jnp.float32(hid))
    w1 = jax.random.uniform(k1, (dx, hid), jnp.float32, -lim1, lim1)
    b1 = jax.random.uniform(k2, (hid,), jnp.float32, -lim1, lim1)
    w2 = jax.random.uniform(k3, (hid, output_size), jnp.float32, -lim2, lim2)
    b2 = jax.random.uniform(k4, (output_size,), jnp.float32, -lim2, lim2)
    return w1, b1, w2, b2


if __name__ == "__main__":
    key = jax.random.PRNGKey(0)
    dx = 16
    hid = 24
    output_size = 8

    k_x, k_p = jax.random.split(key)
    # Leading structure exercises the x.view(-1, dx) path: flattens to (8, 16).
    x = jax.random.normal(k_x, (4, 2, 16), jnp.float32)
    w1, b1, w2, b2 = init_mlp_params(k_p, dx, output_size, hid)

    # Pure-JAX reference.
    x2d = x.reshape(-1, dx)
    ref = jnp.maximum(x2d @ w1 + b1, 0.0) @ w2 + b2

    # --- f32 opt-in path (exact semantics of the PyTorch module) ------------
    params_f32 = prepare_mlp_params(w1, b1, w2, b2, compute_dtype=jnp.float32)
    y = jax.block_until_ready(mlp_forward(x, params_f32))
    assert y.shape == ref.shape
    assert jnp.allclose(y, ref, atol=1e-5, rtol=1e-5)

    # --- bf16 default path (f32 accumulation on the MXU) --------------------
    params_bf16 = prepare_mlp_params(w1, b1, w2, b2)  # bfloat16 by default
    y_bf16 = jax.block_until_ready(mlp_forward(x, params_bf16))
    assert y_bf16.shape == ref.shape
    assert jnp.allclose(y_bf16, ref, atol=5e-2, rtol=5e-2)

    # --- multi-tile grid: B=40 (ragged last batch block), out=200 -> 2 N-tiles
    dx2, hid2, out2 = 16, 24, 200
    kx2, kp2 = jax.random.split(jax.random.PRNGKey(1))
    x2 = jax.random.normal(kx2, (40, dx2), jnp.float32)
    w1b, b1b, w2b, b2b = init_mlp_params(kp2, dx2, out2, hid2)
    ref2 = jnp.maximum(x2 @ w1b + b1b, 0.0) @ w2b + b2b

    p2_f32 = prepare_mlp_params(w1b, b1b, w2b, b2b, compute_dtype=jnp.float32)
    y2 = jax.block_until_ready(mlp_forward(x2, p2_f32, block_b=16, block_n=128))
    assert y2.shape == ref2.shape
    assert jnp.allclose(y2, ref2, atol=1e-4, rtol=1e-4)

    p2_bf16 = prepare_mlp_params(w1b, b1b, w2b, b2b)  # bf16 default
    y2b = jax.block_until_ready(mlp_forward(x2, p2_bf16, block_b=16, block_n=128))
    assert y2b.shape == ref2.shape
    assert jnp.allclose(y2b, ref2, atol=5e-2, rtol=5e-2)

    print("KERNEL_OK")
</pallas_src>

<mosaic_0001>
module attributes {stable_mosaic.version = 11 : i64} {
  func.func @_mlp_kernel(%arg0: i32, %arg1: i32, %arg2: memref<8x16xf32, #tpu.memory_space<vmem>>, %arg3: memref<16x128xf32, #tpu.memory_space<vmem>>, %arg4: memref<1x128xf32, #tpu.memory_space<vmem>>, %arg5: memref<128x128xf32, #tpu.memory_space<vmem>>, %arg6: memref<1x128xf32, #tpu.memory_space<vmem>>, %arg7: memref<8x128xf32, #tpu.memory_space<vmem>>, %arg8: memref<8x128xf32, #tpu.memory_space<vmem>>) attributes {dimension_semantics = [#tpu.dimension_semantics<parallel>, #tpu.dimension_semantics<arbitrary>], iteration_bounds = array<i64: 1, 1>, scalar_prefetch = 0 : i64, scratch_operands = 1 : i64, tpu.core_type = #tpu.core_type<tc>, window_params = [{transform_indices = @transform_0, window_bounds = array<i64: 8, 16>}, {pipeline_mode = #tpu.pipeline_mode<synchronous>, transform_indices = @transform_1, window_bounds = array<i64: 16, 128>}, {pipeline_mode = #tpu.pipeline_mode<synchronous>, transform_indices = @transform_2, window_bounds = array<i64: 1, 128>}, {pipeline_mode = #tpu.pipeline_mode<synchronous>, transform_indices = @transform_3, window_bounds = array<i64: 128, 128>}, {pipeline_mode = #tpu.pipeline_mode<synchronous>, transform_indices = @transform_4, window_bounds = array<i64: 1, 128>}, {transform_indices = @transform_5, window_bounds = array<i64: 8, 128>}]} {
    %c0_i32 = arith.constant 0 : i32
    %0 = arith.cmpi eq, %arg1, %c0_i32 : i32
    %1 = arith.extui %0 : i1 to i32
    %c0_i32_0 = arith.constant 0 : i32
    %2 = arith.cmpi ne, %1, %c0_i32_0 : i32
    scf.if %2 {
      %c0_8 = arith.constant 0 : index
      %c0_9 = arith.constant 0 : index
      %10 = vector.load %arg2[%c0_8, %c0_9] : memref<8x16xf32, #tpu.memory_space<vmem>>, vector<8x16xf32>
      %c0_10 = arith.constant 0 : index
      %c0_11 = arith.constant 0 : index
      %11 = vector.load %arg3[%c0_10, %c0_11] : memref<16x128xf32, #tpu.memory_space<vmem>>, vector<16x128xf32>
      %cst_12 = arith.constant dense<0.000000e+00> : vector<8x128xf32>
      %12 = tpu.matmul %10, %11, %cst_12 {dimension_numbers = #tpu.dot_dimension_numbers<[1], [0], [0], [1], [0, 0, 1, 1], [], []>} : vector<8x16xf32>, vector<16x128xf32>, vector<8x128xf32> -> vector<8x128xf32>
      %c0_13 = arith.constant 0 : index
      %c0_14 = arith.constant 0 : index
      %13 = vector.load %arg4[%c0_13, %c0_14] : memref<1x128xf32, #tpu.memory_space<vmem>>, vector<1x128xf32>
      %14 = vector.broadcast %13 : vector<1x128xf32> to vector<8x128xf32>
      %15 = arith.addf %12, %14 : vector<8x128xf32>
      %cst_15 = arith.constant 0.000000e+00 : f32
      %16 = vector.broadcast %cst_15 : f32 to vector<8x128xf32>
      %17 = arith.maximumf %15, %16 : vector<8x128xf32>
      %c0_16 = arith.constant 0 : index
      %c0_17 = arith.constant 0 : index
      %18 = vector.load %arg8[%c0_16, %c0_17] : memref<8x128xf32, #tpu.memory_space<vmem>>, vector<8x128xf32>
      tpu.vector_store %arg8[%c0_16, %c0_17], %17 {strides = array<i32>} : memref<8x128xf32, #tpu.memory_space<vmem>>, vector<8x128xf32>,
    } else {
    }
    %c0 = arith.constant 0 : index
    %c0_1 = arith.constant 0 : index
    %3 = vector.load %arg8[%c0, %c0_1] : memref<8x128xf32, #tpu.memory_space<vmem>>, vector<8x128xf32>
    %c0_2 = arith.constant 0 : index
    %c0_3 = arith.constant 0 : index
    %4 = vector.load %arg5[%c0_2, %c0_3] : memref<128x128xf32, #tpu.memory_space<vmem>>, vector<128x128xf32>
    %cst = arith.constant dense<0.000000e+00> : vector<8x128xf32>
    %5 = tpu.matmul %3, %4, %cst {dimension_numbers = #tpu.dot_dimension_numbers<[1], [0], [0], [1], [0, 0, 1, 1], [], []>} : vector<8x128xf32>, vector<128x128xf32>, vector<8x128xf32> -> vector<8x128xf32>
    %c0_4 = arith.constant 0 : index
    %c0_5 = arith.constant 0 : index
    %6 = vector.load %arg6[%c0_4, %c0_5] : memref<1x128xf32, #tpu.memory_space<vmem>>, vector<1x128xf32>
    %7 = vector.broadcast %6 : vector<1x128xf32> to vector<8x128xf32>
    %8 = arith.addf %5, %7 : vector<8x128xf32>
    %c0_6 = arith.constant 0 : index
    %c0_7 = arith.constant 0 : index
    %9 = vector.load %arg7[%c0_6, %c0_7] : memref<8x128xf32, #tpu.memory_space<vmem>>, vector<8x128xf32>
    tpu.vector_store %arg7[%c0_6, %c0_7], %8 {strides = array<i32>} : memref<8x128xf32, #tpu.memory_space<vmem>>, vector<8x128xf32>,
    return
  }
  func.func @transform_0(%arg0: i32, %arg1: i32) -> (i32, i32) {
    %c0_i32 = arith.constant 0 : i32
    %c0_i32_0 = arith.constant 0 : i32
    return %arg0, %c0_i32 : i32, i32
  }
  func.func @transform_1(%arg0: i32, %arg1: i32) -> (i32, i32) {
    %c0_i32 = arith.constant 0 : i32
    %c0_i32_0 = arith.constant 0 : i32
    %c0_i32_1 = arith.constant 0 : i32
    return %c0_i32, %c0_i32_0 : i32, i32
  }
  func.func @transform_2(%arg0: i32, %arg1: i32) -> (i32, i32) {
    %c0_i32 = arith.constant 0 : i32
    %c0_i32_0 = arith.constant 0 : i32
    %c0_i32_1 = arith.constant 0 : i32
    return %c0_i32, %c0_i32_0 : i32, i32
  }
  func.func @transform_3(%arg0: i32, %arg1: i32) -> (i32, i32) {
    %c0_i32 = arith.constant 0 : i32
    %c0_i32_0 = arith.constant 0 : i32
    return %c0_i32, %arg1 : i32, i32
  }
  func.func @transform_4(%arg0: i32, %arg1: i32) -> (i32, i32) {
    %c0_i32 = arith.constant 0 : i32
    %c0_i32_0 = arith.constant 0 : i32
    return %c0_i32, %arg1 : i32, i32
  }
  func.func @transform_5(%arg0: i32, %arg1: i32) -> (i32, i32) {
    %c0_i32 = arith.constant 0 : i32
    return %arg0, %arg1 : i32, i32
  }
}

module attributes {stable_mosaic.version = 11 : i64} {
  func.func @_mlp_kernel(%arg0: i32, %arg1: i32, %arg2: memref<8x16xf32, #tpu.memory_space<vmem>>, %arg3: memref<16x128xf32, #tpu.memory_space<vmem>>, %arg4: memref<1x128xf32, #tpu.memory_space<vmem>>, %arg5: memref<128x128xf32, #tpu.memory_space<vmem>>, %arg6: memref<1x128xf32, #tpu.memory_space<vmem>>, %arg7: memref<8x128xf32, #tpu.memory_space<vmem>>, %arg8: memref<8x128xf32, #tpu.memory_space<vmem>>) attributes {dimension_semantics = [#tpu.dimension_semantics<parallel>, #tpu.dimension_semantics<arbitrary>], iteration_bounds = array<i64: 1, 1>, scalar_prefetch = 0 : i64, scratch_operands = 1 : i64, tpu.core_type = #tpu.core_type<tc>, window_params = [{transform_indices = @transform_0, window_bounds = array<i64: 8, 16>}, {pipeline_mode = #tpu.pipeline_mode<synchronous>, transform_indices = @transform_1, window_bounds = array<i64: 16, 128>}, {pipeline_mode = #tpu.pipeline_mode<synchronous>, transform_indices = @transform_2, window_bounds = array<i64: 1, 128>}, {transform_indices = @transform_3, window_bounds = array<i64: 128, 128>}, {transform_indices = @transform_4, window_bounds = array<i64: 1, 128>}, {transform_indices = @transform_5, window_bounds = array<i64: 8, 128>}]} {
    %c0_i32 = arith.constant 0 : i32
    %0 = arith.cmpi eq, %arg1, %c0_i32 : i32
    %1 = arith.extui %0 : i1 to i32
    %c0_i32_0 = arith.constant 0 : i32
    %2 = arith.cmpi ne, %1, %c0_i32_0 : i32
    scf.if %2 {
      %c0_8 = arith.constant 0 : index
      %c0_9 = arith.constant 0 : index
      %10 = vector.load %arg2[%c0_8, %c0_9] : memref<8x16xf32, #tpu.memory_space<vmem>>, vector<8x16xf32>
      %c0_10 = arith.constant 0 : index
      %c0_11 = arith.constant 0 : index
      %11 = vector.load %arg3[%c0_10, %c0_11] : memref<16x128xf32, #tpu.memory_space<vmem>>, vector<16x128xf32>
      %cst_12 = arith.constant dense<0.000000e+00> : vector<8x128xf32>
      %12 = tpu.matmul %10, %11, %cst_12 {dimension_numbers = #tpu.dot_dimension_numbers<[1], [0], [0], [1], [0, 0, 1, 1], [], []>} : vector<8x16xf32>, vector<16x128xf32>, vector<8x128xf32> -> vector<8x128xf32>
      %c0_13 = arith.constant 0 : index
      %c0_14 = arith.constant 0 : index
      %13 = vector.load %arg4[%c0_13, %c0_14] : memref<1x128xf32, #tpu.memory_space<vmem>>, vector<1x128xf32>
      %14 = vector.broadcast %13 : vector<1x128xf32> to vector<8x128xf32>
      %15 = arith.addf %12, %14 : vector<8x128xf32>
      %cst_15 = arith.constant 0.000000e+00 : f32
      %16 = vector.broadcast %cst_15 : f32 to vector<8x128xf32>
      %17 = arith.maximumf %15, %16 : vector<8x128xf32>
      %c0_16 = arith.constant 0 : index
      %c0_17 = arith.constant 0 : index
      %18 = vector.load %arg8[%c0_16, %c0_17] : memref<8x128xf32, #tpu.memory_space<vmem>>, vector<8x128xf32>
      tpu.vector_store %arg8[%c0_16, %c0_17], %17 {strides = array<i32>} : memref<8x128xf32, #tpu.memory_space<vmem>>, vector<8x128xf32>,
    } else {
    }
    %c0 = arith.constant 0 : index
    %c0_1 = arith.constant 0 : index
    %3 = vector.load %arg8[%c0, %c0_1] : memref<8x128xf32, #tpu.memory_space<vmem>>, vector<8x128xf32>
    %c0_2 = arith.constant 0 : index
    %c0_3 = arith.constant 0 : index
    %4 = vector.load %arg5[%c0_2, %c0_3] : memref<128x128xf32, #tpu.memory_space<vmem>>, vector<128x128xf32>
    %cst = arith.constant dense<0.000000e+00> : vector<8x128xf32>
    %5 = tpu.matmul %3, %4, %cst {dimension_numbers = #tpu.dot_dimension_numbers<[1], [0], [0], [1], [0, 0, 1, 1], [], []>} : vector<8x128xf32>, vector<128x128xf32>, vector<8x128xf32> -> vector<8x128xf32>
    %c0_4 = arith.constant 0 : index
    %c0_5 = arith.constant 0 : index
    %6 = vector.load %arg6[%c0_4, %c0_5] : memref<1x128xf32, #tpu.memory_space<vmem>>, vector<1x128xf32>
    %7 = vector.broadcast %6 : vector<1x128xf32> to vector<8x128xf32>
    %8 = arith.addf %5, %7 : vector<8x128xf32>
    %c0_6 = arith.constant 0 : index
    %c0_7 = arith.constant 0 : index
    %9 = vector.load %arg7[%c0_6, %c0_7] : memref<8x128xf32, #tpu.memory_space<vmem>>, vector<8x128xf32>
    tpu.vector_store %arg7[%c0_6, %c0_7], %8 {strides = array<i32>} : memref<8x128xf32, #tpu.memory_space<vmem>>, vector<8x128xf32>,
    return
  }
  func.func @transform_0(%arg0: i32, %arg1: i32) -> (i32, i32) {
    %c0_i32 = arith.constant 0 : i32
    %c0_i32_0 = arith.constant 0 : i32
    return %arg0, %c0_i32 : i32, i32
  }
  func.func @transform_1(%arg0: i32, %arg1: i32) -> (i32, i32) {
    %c0_i32 = arith.constant 0 : i32
    %c0_i32_0 = arith.constant 0 : i32
    %c0_i32_1 = arith.constant 0 : i32
    return %c0_i32, %c0_i32_0 : i32, i32
  }
  func.func @transform_2(%arg0: i32, %arg1: i32) -> (i32, i32) {
    %c0_i32 = arith.constant 0 : i32
    %c0_i32_0 = arith.constant 0 : i32
    %c0_i32_1 = arith.constant 0 : i32
    return %c0_i32, %c0_i32_0 : i32, i32
  }
  func.func @transform_3(%arg0: i32, %arg1: i32) -> (i32, i32) {
    %c0_i32 = arith.constant 0 : i32
    %c0_i32_0 = arith.constant 0 : i32
    return %c0_i32, %arg1 : i32, i32
  }
  func.func @transform_4(%arg0: i32, %arg1: i32) -> (i32, i32) {
    %c0_i32 = arith.constant 0 : i32
    %c0_i32_0 = arith.constant 0 : i32
    return %c0_i32, %arg1 : i32, i32
  }
  func.func @transform_5(%arg0: i32, %arg1: i32) -> (i32, i32) {
    %c0_i32 = arith.constant 0 : i32
    return %arg0, %arg1 : i32, i32
  }
}

</mosaic_0001>

<bundles_post_ra>
// kernel: tpu_custom_call.1
= control target key start
LH: loop header
LB: loop body
LE: loop exit
PB: predicated region body
PF: predicated region fallthrough
CT: control target
= control target key end

     0   :  { %10 = vsyncpa [#allocation4], 0  ;;  %s555_s0 = inlined_call_operand.hbm [shape: f32[8,16], index: 0, kind: input, shape index: {}]   ;;  %s556_s1 = inlined_call_operand.hbm [shape: f32[16,128], index: 1, kind: input, shape index: {}]   ;;  %s557_s2 = inlined_call_operand.vmem [shape: f32[1,128], index: 2, kind: input, shape index: {}]   ;;  %s558_s3 = inlined_call_operand.hbm [shape: f32[128,128], index: 3, kind: input, shape index: {}]   ;;  %s559_s4 = inlined_call_operand.vmem [shape: f32[1,128], index: 4, kind: input, shape index: {}]   ;;  %s560_s5 = inlined_call_operand.hbm [shape: f32[8,128], index: 5, kind: output, shape index: {}]  }
   0x1   :  { %11 = vsyncpa [#allocation7], 0 }
   0x2   :  { %12 = vsyncpa [#allocation5], 0  ;;  %s456_s18 = smov [#allocation6]   ;;  %s362_s22 = scalar_lea.hbm %s556_s1, 256 }
   0x3   :  { %s28_s19 = sshll.u32 %s456_s18, 4  ;;  %p363_p0 = scmp.ne.s32.totalorder %s556_s1, %s362_s22  ;;  %s29_s19 = int_to_ptr.vmem [resolvable:$true] %s28_s19 }
   0x4   :  { %p366_p1 = scmp.lt.u32.totalorder %s362_s22, %s556_s1 }
   0x6   :  { %p368_p2 = pnand %p366_p1, %p363_p0 }
   0x8   :  { %371 = shalt.err (!%p368_p2)
}
   0x9   :  { %s372_s27 = scalar_lea.vmem %s29_s19, 256  ;;  %p377_p4 = scmp.lt.s32.totalorder %s29_s19, %s29_s19 }
   0xa   :  { %p373_p3 = scmp.ne.s32.totalorder %s29_s19, %s372_s27  ;;  %p378_p5 = scmp.lt.s32.totalorder %s372_s27, %s372_s27 }
   0xc   :  { %p379_p6 = por %p378_p5, %p377_p4 }
   0xe   :  { %p380_p7 = pnand %p379_p6, %p373_p3 }
  0x10   :  { %383 = shalt.err (!%p380_p7)
}
  0x11   :  { %s457_s28 = smov 128   ;;  %s458_s29 = smov 8  }
  0x12   :  { %34 = dma.hbm_to_vmem [thread:$0]  %s556_s1, 256, %s29_s19, [#allocation7], %s457_s28, %s457_s28, %s458_s29  }
  0x13   :  { %s459_s7 = smov [#allocation3]   ;;  %s460_s9 = smov [#allocation8]  }
  0x14   :  { %s19_s8 = sshll.u32 %s459_s7, 4  ;;  %s42_s10 = sshll.u32 %s460_s9, 4  ;;  %s20_s8 = int_to_ptr.vmem [resolvable:$true] %s19_s8  ;;  %s43_s10 = int_to_ptr.vmem [resolvable:$true] %s42_s10 }
  0x15   :  { %s384_s13 = scalar_lea.hbm %s555_s0, 128 }
  0x16   :  { %p385_p8 = scmp.ne.s32.totalorder %s555_s0, %s384_s13  ;;  %p388_p9 = scmp.lt.u32.totalorder %s384_s13, %s555_s0 }
  0x18   :  { %p390_p10 = pnand %p388_p9, %p385_p8 }
  0x1a   :  { %393 = shalt.err (!%p390_p10)
}
  0x1b   :  { %s394_s1 = scalar_lea.vmem %s20_s8, 128  ;;  %p399_p12 = scmp.lt.s32.totalorder %s20_s8, %s20_s8 }
  0x1c   :  { %p395_p11 = scmp.ne.s32.totalorder %s20_s8, %s394_s1  ;;  %p400_p13 = scmp.lt.s32.totalorder %s394_s1, %s394_s1 }
  0x1e   :  { %p401_p0 = por %p400_p13, %p399_p12 }
  0x20   :  { %p402_p1 = pnand %p401_p0, %p395_p11 }
  0x22   :  { %405 = shalt.err (!%p402_p1)
}
  0x23   :  { %22 = dma.hbm_to_vmem [thread:$0]  %s555_s0, 128, %s20_s8, [#allocation4]  }
  0x24   :  { %s406_s22 = scalar_lea.hbm %s558_s3, 2048 }
  0x25   :  { %p407_p2 = scmp.ne.s32.totalorder %s558_s3, %s406_s22  ;;  %p410_p3 = scmp.lt.u32.totalorder %s406_s22, %s558_s3 }
  0x27   :  { %p412_p4 = pnand %p410_p3, %p407_p2 }
  0x29   :  { %415 = shalt.err (!%p412_p4)
}
  0x2a   :  { %s416_s27 = scalar_lea.vmem %s43_s10, 2048  ;;  %p421_p6 = scmp.lt.s32.totalorder %s43_s10, %s43_s10 }
  0x2b   :  { %p417_p5 = scmp.ne.s32.totalorder %s43_s10, %s416_s27  ;;  %p422_p7 = scmp.lt.s32.totalorder %s416_s27, %s416_s27 }
  0x2d   :  { %p423_p8 = por %p422_p7, %p421_p6 }
  0x2f   :  { %p424_p9 = pnand %p423_p8, %p417_p5 }
  0x31   :  { %427 = shalt.err (!%p424_p9)
}
  0x32   :  { %48 = dma.hbm_to_vmem [thread:$0]  %s558_s3, 2048, %s43_s10, [#allocation7], %s457_s28, %s457_s28, %s458_s29  }
  0x33   :  { %450 = dma.done.wait [#allocation4], 128  }
  0x34   :  { %451 = vsyncadd [#allocation4], 4294967168 }
  0x35   :  { %452 = dma.done.wait [#allocation7], 2304  }
  0x36   :  { %453 = vsyncadd [#allocation7], 4294964992  ;;  %v461_v0 = vmov 0.0|0.0   ;;  %vm462_vm0 = vmmov 0   ;;  %v463_v1 = vmov 0.0   ;;  %v65_v2 = vld [vmem:[#allocation6] sm:$0xff] }
  0x37   :  { %326 = vmatprep.subr.bf16.mxu0 %v461_v0  ;;  %288 = vmatprep.mubr.msk.f32.mxu0 %vm462_vm0, %v463_v1  ;;  %v66_v3 = vld [vmem:[#allocation6 + $0x8] sm:$0xff]  ;;  %v151_v5 = vld [vmem:[#allocation8] sm:$0xff]  ;;  %v152_v6 = vld [vmem:[#allocation8 + $0x8] sm:$0xff]  ;;  %vm74_vm1 = vcmask 130048   ;;  %s464_s7 = smov [#allocation9]  }
  0x38   :  { %329 = vmatprep.subr.bf16.mxu1 %v461_v0  ;;  %323 = vmatprep.mubr.msk.f32.mxu1 %vm462_vm0, %v463_v1  ;;  %v327_v4 = vpack.c.bf16 %v66_v3, %v65_v2  ;;  %v153_v7 = vld [vmem:[#allocation8 + $0x10] sm:$0xff]  ;;  %v330_v8 = vpack.c.bf16 %v152_v6, %v151_v5  ;;  %v154_v9 = vld [vmem:[#allocation8 + $0x18] sm:$0xff]  ;;  %v64_v10 = vld [vmem:[#allocation3] sm:$0xff]  ;;  %s251_s8 = sshll.u32 %s464_s7, 4  ;;  %s252_s8 = int_to_ptr.vmem [resolvable:$true] %s251_s8 }
  0x39   :  { %v333_v11 = vpack.c.bf16 %v154_v9, %v153_v7  ;;  %v155_v12 = vld [vmem:[#allocation8 + $0x20] sm:$0xff]  ;;  %v156_v13 = vld [vmem:[#allocation8 + $0x28] sm:$0xff]  ;;  %v157_v15 = vld [vmem:[#allocation8 + $0x30] sm:$0xff]  ;;  %s428_s9 = scalar_lea.vmem %s252_s8, 128  ;;  %p433_p11 = scmp.lt.s32.totalorder %s252_s8, %s252_s8 }
  0x3a   :  { %328 = vmatpush3.bf16.msra.mxu0 %v327_v4  ;;  %331 = vmatpush3.bf16.msra.mxu1 %v330_v8  ;;  %v336_v14 = vpack.c.bf16 %v156_v13, %v155_v12  ;;  %v158_v16 = vld [vmem:[#allocation8 + $0x38] sm:$0xff]  ;;  %v159_v18 = vld [vmem:[#allocation8 + $0x40] sm:$0xff]  ;;  %v160_v19 = vld [vmem:[#allocation8 + $0x48] sm:$0xff]  ;;  %p429_p10 = scmp.ne.s32.totalorder %s252_s8, %s428_s9  ;;  %p434_p12 = scmp.lt.s32.totalorder %s428_s9, %s428_s9 }
  0x3b   :  { %332 = vmatprep.subr.bf16.mxu1 %v461_v0  ;;  %v339_v17 = vpack.c.bf16 %v158_v16, %v157_v15  ;;  %v342_v20 = vpack.c.bf16 %v160_v19, %v159_v18  ;;  %v161_v21 = vld [vmem:[#allocation8 + $0x50] sm:$0xff]  ;;  %v162_v22 = vld [vmem:[#allocation8 + $0x58] sm:$0xff]  ;;  %v163_v24 = vld [vmem:[#allocation8 + $0x60] sm:$0xff] }
  0x3c   :  { %v345_v23 = vpack.c.bf16 %v162_v22, %v161_v21  ;;  %v164_v25 = vld [vmem:[#allocation8 + $0x68] sm:$0xff]  ;;  %v165_v27 = vld [vmem:[#allocation8 + $0x70] sm:$0xff]  ;;  %v166_v28 = vld [vmem:[#allocation8 + $0x78] sm:$0xff]  ;;  %p435_p13 = por %p434_p12, %p433_p11 }
  0x3d   :  { %289 = vmatmul.mubr.msk.f32.vlgmr.msra.gmra.mrb[0].mxu0 %vm74_vm1, %v64_v10  ;;  %v348_v26 = vpack.c.bf16 %v164_v25, %v163_v24  ;;  %v351_v29 = vpack.c.bf16 %v166_v28, %v165_v27  ;;  %v261_v30 = vld [vmem:[%s557_s2] ss:$0 sm:$0xff] }
  0x3e   :  { %334 = vmatpush3.bf16.msra.mxu1 %v333_v11  ;;  %v263_v35 = vld [vmem:[%s559_s4] ss:$0 sm:$0xff]  ;;  %p436_p0 = pnand %p435_p13, %p429_p10 }
  0x3f   :  { %335 = vmatprep.subr.bf16.mxu1 %v461_v0 }
  0x42   :  { %337 = vmatpush3.bf16.msra.mxu1 %v336_v14 }
  0x43   :  { %338 = vmatprep.subr.bf16.mxu1 %v461_v0 }
  0x46   :  { %340 = vmatpush3.bf16.msra.mxu1 %v339_v17 }
  0x47   :  { %341 = vmatprep.subr.bf16.mxu1 %v461_v0 }
  0x4a   :  { %343 = vmatpush3.bf16.msra.mxu1 %v342_v20 }
  0x4b   :  { %344 = vmatprep.subr.bf16.mxu1 %v461_v0 }
  0x4e   :  { %346 = vmatpush3.bf16.msra.mxu1 %v345_v23 }
  0x4f   :  { %347 = vmatprep.subr.bf16.mxu1 %v461_v0 }
  0x52   :  { %349 = vmatpush3.bf16.msra.mxu1 %v348_v26 }
  0x53   :  { %350 = vmatprep.subr.bf16.mxu1 %v461_v0 }
  0x56   :  { %352 = vmatpush3.bf16.msra.mxu1 %v351_v29 }
 0x110   :  { %v144_v31 = vpop.f32.mrb[0].mxu0 }
 0x111   :  { %v145_v32 = vadd.f32 %v261_v30, %v144_v31  ;;  %v290_v33 = vpop.f32.mrb[1].mxu0 }
 0x113   :  { %v148_v34 = vmax.f32 %v145_v32, 0.0 }
 0x115   :  { %324 = vmatmul.mubr.f32.vlgmr.msra.gmra.mrb[0].mxu1 %v148_v34 }
 0x1e8   :  { %v240_v36 = vpop.f32.mrb[0].mxu1 }
 0x1e9   :  { %v241_v37 = vadd.f32 %v263_v35, %v240_v36  ;;  %v325_v38 = vpop.f32.mrb[1].mxu1 }
 0x1eb   :  { %244 = vst [vmem:[#allocation9] sm:$0xff] %v241_v37 }
 0x1ec   :  { %439 = shalt.err (!%p436_p0)
}
 0x1ed   :  { %s440_s11 = scalar_lea.hbm %s560_s5, 128 }
 0x1ee   :  { %p441_p1 = scmp.ne.s32.totalorder %s560_s5, %s440_s11  ;;  %p444_p2 = scmp.lt.u32.totalorder %s440_s11, %s560_s5 }
 0x1f0   :  { %p446_p3 = pnand %p444_p2, %p441_p1 }
 0x1f2   :  { %449 = shalt.err (!%p446_p3)
}
 0x1f3   :  { %254 = dma.vmem_to_hbm [thread:$0]  %s252_s8, 128, %s560_s5, [#allocation5]  }
 0x1f4   :  { %454 = dma.done.wait [#allocation5], 128  }
 0x1f5   :  { %455 = vsyncadd [#allocation5], 4294967168 }
 0x1f6   :  { %258 = vsyncpa [#allocation4], 1 }
 0x1f7   :  { %259 = vsyncpa [#allocation7], 1 }
 0x1f8   :  { %260 = vsyncpa [#allocation5], 1 }

// kernel: tpu_custom_call.1
= control target key start
LH: loop header
LB: loop body
LE: loop exit
PB: predicated region body
PF: predicated region fallthrough
CT: control target
= control target key end

     0   :  { %10 = vsyncpa [#allocation4], 0  ;;  %s555_s0 = inlined_call_operand.hbm [shape: f32[8,16], index: 0, kind: input, shape index: {}]   ;;  %s556_s1 = inlined_call_operand.hbm [shape: f32[16,128], index: 1, kind: input, shape index: {}]   ;;  %s557_s2 = inlined_call_operand.vmem [shape: f32[1,128], index: 2, kind: input, shape index: {}]   ;;  %s558_s3 = inlined_call_operand.hbm [shape: f32[128,128], index: 3, kind: input, shape index: {}]   ;;  %s559_s4 = inlined_call_operand.vmem [shape: f32[1,128], index: 4, kind: input, shape index: {}]   ;;  %s560_s5 = inlined_call_operand.hbm [shape: f32[8,128], index: 5, kind: output, shape index: {}]  }
   0x1   :  { %11 = vsyncpa [#allocation7], 0 }
   0x2   :  { %12 = vsyncpa [#allocation5], 0  ;;  %s456_s18 = smov [#allocation6]   ;;  %s362_s22 = scalar_lea.hbm %s556_s1, 256 }
   0x3   :  { %s28_s19 = sshll.u32 %s456_s18, 4  ;;  %p363_p0 = scmp.ne.s32.totalorder %s556_s1, %s362_s22  ;;  %s29_s19 = int_to_ptr.vmem [resolvable:$true] %s28_s19 }
   0x4   :  { %p366_p1 = scmp.lt.u32.totalorder %s362_s22, %s556_s1 }
   0x6   :  { %p368_p2 = pnand %p366_p1, %p363_p0 }
   0x8   :  { %371 = shalt.err (!%p368_p2)
}
   0x9   :  { %s372_s27 = scalar_lea.vmem %s29_s19, 256  ;;  %p377_p4 = scmp.lt.s32.totalorder %s29_s19, %s29_s19 }
   0xa   :  { %p373_p3 = scmp.ne.s32.totalorder %s29_s19, %s372_s27  ;;  %p378_p5 = scmp.lt.s32.totalorder %s372_s27, %s372_s27 }
   0xc   :  { %p379_p6 = por %p378_p5, %p377_p4 }
   0xe   :  { %p380_p7 = pnand %p379_p6, %p373_p3 }
  0x10   :  { %383 = shalt.err (!%p380_p7)
}
  0x11   :  { %s457_s28 = smov 128   ;;  %s458_s29 = smov 8  }
  0x12   :  { %34 = dma.hbm_to_vmem [thread:$0]  %s556_s1, 256, %s29_s19, [#allocation7], %s457_s28, %s457_s28, %s458_s29  }
  0x13   :  { %s459_s7 = smov [#allocation3]   ;;  %s460_s9 = smov [#allocation8]  }
  0x14   :  { %s19_s8 = sshll.u32 %s459_s7, 4  ;;  %s42_s10 = sshll.u32 %s460_s9, 4  ;;  %s20_s8 = int_to_ptr.vmem [resolvable:$true] %s19_s8  ;;  %s43_s10 = int_to_ptr.vmem [resolvable:$true] %s42_s10 }
  0x15   :  { %s384_s13 = scalar_lea.hbm %s555_s0, 128 }
  0x16   :  { %p385_p8 = scmp.ne.s32.totalorder %s555_s0, %s384_s13  ;;  %p388_p9 = scmp.lt.u32.totalorder %s384_s13, %s555_s0 }
  0x18   :  { %p390_p10 = pnand %p388_p9, %p385_p8 }
  0x1a   :  { %393 = shalt.err (!%p390_p10)
}
  0x1b   :  { %s394_s1 = scalar_lea.vmem %s20_s8, 128  ;;  %p399_p12 = scmp.lt.s32.totalorder %s20_s8, %s20_s8 }
  0x1c   :  { %p395_p11 = scmp.ne.s32.totalorder %s20_s8, %s394_s1  ;;  %p400_p13 = scmp.lt.s32.totalorder %s394_s1, %s394_s1 }
  0x1e   :  { %p401_p0 = por %p400_p13, %p399_p12 }
  0x20   :  { %p402_p1 = pnand %p401_p0, %p395_p11 }
  0x22   :  { %405 = shalt.err (!%p402_p1)
}
  0x23   :  { %22 = dma.hbm_to_vmem [thread:$0]  %s555_s0, 128, %s20_s8, [#allocation4]  }
  0x24   :  { %s406_s22 = scalar_lea.hbm %s558_s3, 2048 }
  0x25   :  { %p407_p2 = scmp.ne.s32.totalorder %s558_s3, %s406_s22  ;;  %p410_p3 = scmp.lt.u32.totalorder %s406_s22, %s558_s3 }
  0x27   :  { %p412_p4 = pnand %p410_p3, %p407_p2 }
  0x29   :  { %415 = shalt.err (!%p412_p4)
}
  0x2a   :  { %s416_s27 = scalar_lea.vmem %s43_s10, 2048  ;;  %p421_p6 = scmp.lt.s32.totalorder %s43_s10, %s43_s10 }
  0x2b   :  { %p417_p5 = scmp.ne.s32.totalorder %s43_s10, %s416_s27  ;;  %p422_p7 = scmp.lt.s32.totalorder %s416_s27, %s416_s27 }
  0x2d   :  { %p423_p8 = por %p422_p7, %p421_p6 }
  0x2f   :  { %p424_p9 = pnand %p423_p8, %p417_p5 }
  0x31   :  { %427 = shalt.err (!%p424_p9)
}
  0x32   :  { %48 = dma.hbm_to_vmem [thread:$0]  %s558_s3, 2048, %s43_s10, [#allocation7], %s457_s28, %s457_s28, %s458_s29  }
  0x33   :  { %450 = dma.done.wait [#allocation4], 128  }
  0x34   :  { %451 = vsyncadd [#allocation4], 4294967168 }
  0x35   :  { %452 = dma.done.wait [#allocation7], 2304  }
  0x36   :  { %453 = vsyncadd [#allocation7], 4294964992  ;;  %v461_v0 = vmov 0.0|0.0   ;;  %vm462_vm0 = vmmov 0   ;;  %v463_v1 = vmov 0.0   ;;  %v65_v2 = vld [vmem:[#allocation6] sm:$0xff] }
  0x37   :  { %326 = vmatprep.subr.bf16.mxu0 %v461_v0  ;;  %288 = vmatprep.mubr.msk.f32.mxu0 %vm462_vm0, %v463_v1  ;;  %v66_v3 = vld [vmem:[#allocation6 + $0x8] sm:$0xff]  ;;  %v151_v5 = vld [vmem:[#allocation8] sm:$0xff]  ;;  %v152_v6 = vld [vmem:[#allocation8 + $0x8] sm:$0xff]  ;;  %vm74_vm1 = vcmask 130048   ;;  %s464_s7 = smov [#allocation9]  }
  0x38   :  { %329 = vmatprep.subr.bf16.mxu1 %v461_v0  ;;  %323 = vmatprep.mubr.msk.f32.mxu1 %vm462_vm0, %v463_v1  ;;  %v327_v4 = vpack.c.bf16 %v66_v3, %v65_v2  ;;  %v153_v7 = vld [vmem:[#allocation8 + $0x10] sm:$0xff]  ;;  %v330_v8 = vpack.c.bf16 %v152_v6, %v151_v5  ;;  %v154_v9 = vld [vmem:[#allocation8 + $0x18] sm:$0xff]  ;;  %v64_v10 = vld [vmem:[#allocation3] sm:$0xff]  ;;  %s251_s8 = sshll.u32 %s464_s7, 4  ;;  %s252_s8 = int_to_ptr.vmem [resolvable:$true] %s251_s8 }
  0x39   :  { %v333_v11 = vpack.c.bf16 %v154_v9, %v153_v7  ;;  %v155_v12 = vld [vmem:[#allocation8 + $0x20] sm:$0xff]  ;;  %v156_v13 = vld [vmem:[#allocation8 + $0x28] sm:$0xff]  ;;  %v157_v15 = vld [vmem:[#allocation8 + $0x30] sm:$0xff]  ;;  %s428_s9 = scalar_lea.vmem %s252_s8, 128  ;;  %p433_p11 = scmp.lt.s32.totalorder %s252_s8, %s252_s8 }
  0x3a   :  { %328 = vmatpush3.bf16.msra.mxu0 %v327_v4  ;;  %331 = vmatpush3.bf16.msra.mxu1 %v330_v8  ;;  %v336_v14 = vpack.c.bf16 %v156_v13, %v155_v12  ;;  %v158_v16 = vld [vmem:[#allocation8 + $0x38] sm:$0xff]  ;;  %v159_v18 = vld [vmem:[#allocation8 + $0x40] sm:$0xff]  ;;  %v160_v19 = vld [vmem:[#allocation8 + $0x48] sm:$0xff]  ;;  %p429_p10 = scmp.ne.s32.totalorder %s252_s8, %s428_s9  ;;  %p434_p12 = scmp.lt.s32.totalorder %s428_s9, %s428_s9 }
  0x3b   :  { %332 = vmatprep.subr.bf16.mxu1 %v461_v0  ;;  %v339_v17 = vpack.c.bf16 %v158_v16, %v157_v15  ;;  %v342_v20 = vpack.c.bf16 %v160_v19, %v159_v18  ;;  %v161_v21 = vld [vmem:[#allocation8 + $0x50] sm:$0xff]  ;;  %v162_v22 = vld [vmem:[#allocation8 + $0x58] sm:$0xff]  ;;  %v163_v24 = vld [vmem:[#allocation8 + $0x60] sm:$0xff] }
  0x3c   :  { %v345_v23 = vpack.c.bf16 %v162_v22, %v161_v21  ;;  %v164_v25 = vld [vmem:[#allocation8 + $0x68] sm:$0xff]  ;;  %v165_v27 = vld [vmem:[#allocation8 + $0x70] sm:$0xff]  ;;  %v166_v28 = vld [vmem:[#allocation8 + $0x78] sm:$0xff]  ;;  %p435_p13 = por %p434_p12, %p433_p11 }
  0x3d   :  { %289 = vmatmul.mubr.msk.f32.vlgmr.msra.gmra.mrb[0].mxu0 %vm74_vm1, %v64_v10  ;;  %v348_v26 = vpack.c.bf16 %v164_v25, %v163_v24  ;;  %v351_v29 = vpack.c.bf16 %v166_v28, %v165_v27  ;;  %v261_v30 = vld [vmem:[%s557_s2] ss:$0 sm:$0xff] }
  0x3e   :  { %334 = vmatpush3.bf16.msra.mxu1 %v333_v11  ;;  %v263_v35 = vld [vmem:[%s559_s4] ss:$0 sm:$0xff]  ;;  %p436_p0 = pnand %p435_p13, %p429_p10 }
  0x3f   :  { %335 = vmatprep.subr.bf16.mxu1 %v461_v0 }
  0x42   :  { %337 = vmatpush3.bf16.msra.mxu1 %v336_v14 }
  0x43   :  { %338 = vmatprep.subr.bf16.mxu1 %v461_v0 }
  0x46   :  { %340 = vmatpush3.bf16.msra.mxu1 %v339_v17 }
  0x47   :  { %341 = vmatprep.subr.bf16.mxu1 %v461_v0 }
  0x4a   :  { %343 = vmatpush3.bf16.msra.mxu1 %v342_v20 }
  0x4b   :  { %344 = vmatprep.subr.bf16.mxu1 %v461_v0 }
  0x4e   :  { %346 = vmatpush3.bf16.msra.mxu1 %v345_v23 }
  0x4f   :  { %347 = vmatprep.subr.bf16.mxu1 %v461_v0 }
  0x52   :  { %349 = vmatpush3.bf16.msra.mxu1 %v348_v26 }
  0x53   :  { %350 = vmatprep.subr.bf16.mxu1 %v461_v0 }
  0x56   :  { %352 = vmatpush3.bf16.msra.mxu1 %v351_v29 }
 0x110   :  { %v144_v31 = vpop.f32.mrb[0].mxu0 }
 0x111   :  { %v145_v32 = vadd.f32 %v261_v30, %v144_v31  ;;  %v290_v33 = vpop.f32.mrb[1].mxu0 }
 0x113   :  { %v148_v34 = vmax.f32 %v145_v32, 0.0 }
 0x115   :  { %324 = vmatmul.mubr.f32.vlgmr.msra.gmra.mrb[0].mxu1 %v148_v34 }
 0x1e8   :  { %v240_v36 = vpop.f32.mrb[0].mxu1 }
 0x1e9   :  { %v241_v37 = vadd.f32 %v263_v35, %v240_v36  ;;  %v325_v38 = vpop.f32.mrb[1].mxu1 }
 0x1eb   :  { %244 = vst [vmem:[#allocation9] sm:$0xff] %v241_v37 }
 0x1ec   :  { %439 = shalt.err (!%p436_p0)
}
 0x1ed   :  { %s440_s11 = scalar_lea.hbm %s560_s5, 128 }
 0x1ee   :  { %p441_p1 = scmp.ne.s32.totalorder %s560_s5, %s440_s11  ;;  %p444_p2 = scmp.lt.u32.totalorder %s440_s11, %s560_s5 }
 0x1f0   :  { %p446_p3 = pnand %p444_p2, %p441_p1 }
 0x1f2   :  { %449 = shalt.err (!%p446_p3)
}
 0x1f3   :  { %254 = dma.vmem_to_hbm [thread:$0]  %s252_s8, 128, %s560_s5, [#allocation5]  }
 0x1f4   :  { %454 = dma.done.wait [#allocation5], 128  }
 0x1f5   :  { %455 = vsyncadd [#allocation5], 4294967168 }
 0x1f6   :  { %258 = vsyncpa [#allocation4], 1 }
 0x1f7   :  { %259 = vsyncpa [#allocation7], 1 }
 0x1f8   :  { %260 = vsyncpa [#allocation5], 1 }

</bundles_post_ra>
